<compile_context>
chip_gen: v5e
topology: v5e:2x2
jax: 0.10.0
libtpu: 0.0.40
codegen_flags: <defaults>
</compile_context>

<pallas_src>
import jax
import jax.numpy as jnp
from jax.experimental import pallas as pl
from jax.experimental.pallas import tpu as pltpu

_SQRT_2_OVER_PI = 0.7978845608028654


def _gelu_tanh(x):
    # tanh-form GELU: the transcendental lowers to the EUP slot on TPU.
    # (The module's activation_fn is configurable; tanh-GELU is the standard
    #  approximation of torch.nn.functional.gelu.)
    return 0.5 * x * (1.0 + jnp.tanh(_SQRT_2_OVER_PI * (x + 0.044715 * x * x * x)))


def _pick_row_tile(n, max_rows=2048):
    """Pick TI (tile over the query-atom axis) such that TI divides n,
    TI*n <= max_rows, and TI is a multiple of 8 (or TI == n), so every block
    shape stays TPU-tileable and the per-step VMEM working set is bounded."""
    if n * n <= max_rows:
        return n
    for ti in range(n, 0, -1):
        if n % ti == 0 and ti * n <= max_rows and (ti % 8 == 0 or ti == n):
            return ti
    return n


def se3_coord_kernel(x_ref, d_ref, w1_ref, b1_ref, w2_ref, b2_ref, smat_ref, o_ref):
    TI, N, H = x_ref.shape
    R = TI * N

    # (TI, N, H) -> (TI*N, H): leading-dim merge, last dim unchanged (cheap).
    x = x_ref[...].reshape(R, H)                                   # bf16

    # linear1 on the MXU (bf16 operands, f32 accumulation) + tanh-GELU (EUP).
    h = jnp.dot(x, w1_ref[...], preferred_element_type=jnp.float32) + b1_ref[...]
    h = _gelu_tanh(h)

    # linear2 (heads -> 1): f32 elementwise multiply + lane reduction.
    attn = jnp.sum(h * w2_ref[...], axis=-1, keepdims=True) + b2_ref[...]   # (R, 1)

    # Weight the coordinate differences and sum over the key-atom axis j
    # (each group of N consecutive rows shares one query atom i).
    d = d_ref[...].reshape(R, 3)                                   # (R, 3) f32
    contrib = attn * d                                             # (R, 3)
    upd = jnp.dot(smat_ref[...], contrib,
                  preferred_element_type=jnp.float32)              # (TI, 3)

    o_ref[...] = upd.astype(o_ref.dtype)


def se3_coord_head(src_coord, delta_pair_rep, params, padding_mask=None):
    """src_coord: (B, N, 3) f32; delta_pair_rep: (B, N, N, H) f32;
    padding_mask: optional (B, N), 1/True = padded.  Returns (B, N, 3) f32."""
    B, N, _ = src_coord.shape
    H = delta_pair_rep.shape[-1]
    TI = _pick_row_tile(N)
    assert N % TI == 0

    # Pairwise coordinate differences: delta_pos[b, i, j] = coord[b, j] - coord[b, i].
    delta_pos = (src_coord[:, None, :, :] - src_coord[:, :, None, :]).astype(jnp.float32)

    # bf16 MXU operands for the dominant GEMM (halves HBM traffic of the big tensor).
    x_bf16 = delta_pair_rep.astype(jnp.bfloat16)
    w1_t = params["w1"].T.astype(jnp.bfloat16)                  # (H, H): h = x @ W1^T
    b1 = params["b1"].reshape(1, H).astype(jnp.float32)
    w2 = params["w2"].reshape(1, H).astype(jnp.float32)         # Linear(H, 1).weight
    b2 = params["b2"].reshape(1, 1).astype(jnp.float32)

    # 0/1 matrix summing each group of N consecutive pair-rows (fixed i, all j).
    smat = jnp.repeat(jnp.eye(TI, dtype=jnp.float32), N, axis=1)    # (TI, TI*N)

    raw_update = pl.pallas_call(
        se3_coord_kernel,
        out_shape=jax.ShapeDtypeStruct((B, N, 3), jnp.float32),
        grid_spec=pltpu.PrefetchScalarGridSpec(
            num_scalar_prefetch=0,
            grid=(B, N // TI),
            in_specs=[
                pl.BlockSpec((None, TI, N, H), lambda b, it: (b, it, 0, 0)),
                pl.BlockSpec((None, TI, N, 3), lambda b, it: (b, it, 0, 0)),
                pl.BlockSpec((H, H), lambda b, it: (0, 0)),
                pl.BlockSpec((1, H), lambda b, it: (0, 0)),
                pl.BlockSpec((1, H), lambda b, it: (0, 0)),
                pl.BlockSpec((1, 1), lambda b, it: (0, 0)),
                pl.BlockSpec((TI, TI * N), lambda b, it: (0, 0)),
            ],
            out_specs=pl.BlockSpec((None, TI, 3), lambda b, it: (b, it, 0)),
        ),
        compiler_params=pltpu.CompilerParams(
            dimension_semantics=("parallel", "parallel"),
            vmem_limit_bytes=32 * 1024 * 1024,
        ),
    )(x_bf16, delta_pos, w1_t, b1, w2, b2, smat)

    # Per-batch atom_num normalization + residual add (tiny; stays in XLA).
    if padding_mask is not None:
        atom_num = (jnp.sum(1.0 - padding_mask.astype(src_coord.dtype), axis=1)
                    - 1.0).reshape(B, 1, 1)
    else:
        atom_num = jnp.asarray(N - 1, src_coord.dtype)
    return src_coord + raw_update / atom_num


def se3_coord_head_ref(src_coord, delta_pair_rep, params, padding_mask=None):
    """Pure-JAX reference mirroring the kernel's mixed-precision policy
    (bf16 MXU operands, f32 accumulation / elementwise math)."""
    B, N, _ = src_coord.shape
    H = delta_pair_rep.shape[-1]
    x = delta_pair_rep.astype(jnp.bfloat16).reshape(-1, H)
    h = jnp.dot(x, params["w1"].T.astype(jnp.bfloat16),
                preferred_element_type=jnp.float32) + params["b1"]
    h = _gelu_tanh(h)
    attn = jnp.sum(h * params["w2"].reshape(1, H), axis=-1, keepdims=True) + params["b2"]
    attn = attn.reshape(B, N, N, 1)
    delta_pos = src_coord[:, None, :, :] - src_coord[:, :, None, :]
    if padding_mask is not None:
        atom_num = (jnp.sum(1.0 - padding_mask.astype(src_coord.dtype), axis=1)
                    - 1.0).reshape(B, 1, 1, 1)
    else:
        atom_num = N - 1
    coord_update = jnp.sum(delta_pos / atom_num * attn, axis=2)
    return src_coord + coord_update


def init_params(key, heads):
    k1, k2, k3, k4 = jax.random.split(key, 4)
    s = float(heads) ** -0.5
    return {
        "w1": jax.random.normal(k1, (heads, heads), jnp.float32) * s,   # linear1.weight (out, in)
        "b1": jax.random.normal(k2, (heads,), jnp.float32) * 0.02,
        "w2": jax.random.normal(k3, (1, heads), jnp.float32) * s,       # linear2.weight (1, heads)
        "b2": jax.random.normal(k4, (1,), jnp.float32) * 0.02,
    }


if __name__ == "__main__":
    B, N, H = 2, 16, 32   # batch, atoms (seq_len), heads

    key = jax.random.PRNGKey(0)
    kc, kx, kp = jax.random.split(key, 3)
    src_coord = jax.random.normal(kc, (B, N, 3), jnp.float32)
    delta_pair_rep = jax.random.normal(kx, (B, N, N, H), jnp.float32)
    params = init_params(kp, H)

    # padding_mask=None path
    out = jax.block_until_ready(se3_coord_head(src_coord, delta_pair_rep, params))
    ref = se3_coord_head_ref(src_coord, delta_pair_rep, params)
    assert out.shape == (B, N, 3)
    assert jnp.allclose(out, ref, atol=2e-2, rtol=2e-2), "mismatch vs reference (no mask)"

    # padding_mask path (mask only rescales atom_num; handled in the XLA wrapper)
    padding_mask = jnp.broadcast_to(jnp.arange(N)[None, :] >= (N - 2), (B, N))
    out_m = jax.block_until_ready(
        se3_coord_head(src_coord, delta_pair_rep, params, padding_mask=padding_mask))
    ref_m = se3_coord_head_ref(src_coord, delta_pair_rep, params, padding_mask=padding_mask)
    assert jnp.allclose(out_m, ref_m, atol=2e-2, rtol=2e-2), "mismatch vs reference (mask)"

    print("KERNEL_OK")
</pallas_src>

<mosaic_0001>
module attributes {stable_mosaic.version = 11 : i64} {
  func.func @se3_coord_kernel(%arg0: i32, %arg1: i32, %arg2: memref<1x16x16x32xbf16, #tpu.memory_space<vmem>>, %arg3: memref<1x16x16x3xf32, #tpu.memory_space<vmem>>, %arg4: memref<32x32xbf16, #tpu.memory_space<vmem>>, %arg5: memref<1x32xf32, #tpu.memory_space<vmem>>, %arg6: memref<1x32xf32, #tpu.memory_space<vmem>>, %arg7: memref<1x1xf32, #tpu.memory_space<vmem>>, %arg8: memref<16x256xf32, #tpu.memory_space<vmem>>, %arg9: memref<1x16x3xf32, #tpu.memory_space<vmem>>) attributes {dimension_semantics = [#tpu.dimension_semantics<parallel>, #tpu.dimension_semantics<parallel>], iteration_bounds = array<i64: 2, 1>, scalar_prefetch = 0 : i64, scratch_operands = 0 : i64, tpu.core_type = #tpu.core_type<tc>, window_params = [{transform_indices = @transform_0, window_bounds = array<i64: 1, 16, 16, 32>}, {transform_indices = @transform_1, window_bounds = array<i64: 1, 16, 16, 3>}, {pipeline_mode = #tpu.pipeline_mode<synchronous>, transform_indices = @transform_2, window_bounds = array<i64: 32, 32>}, {pipeline_mode = #tpu.pipeline_mode<synchronous>, transform_indices = @transform_3, window_bounds = array<i64: 1, 32>}, {pipeline_mode = #tpu.pipeline_mode<synchronous>, transform_indices = @transform_4, window_bounds = array<i64: 1, 32>}, {pipeline_mode = #tpu.pipeline_mode<synchronous>, transform_indices = @transform_5, window_bounds = array<i64: 1, 1>}, {pipeline_mode = #tpu.pipeline_mode<synchronous>, transform_indices = @transform_6, window_bounds = array<i64: 16, 256>}, {transform_indices = @transform_7, window_bounds = array<i64: 1, 16, 3>}]} {
    %c0 = arith.constant 0 : index
    %c0_0 = arith.constant 0 : index
    %c0_1 = arith.constant 0 : index
    %c0_2 = arith.constant 0 : index
    %0 = vector.load %arg2[%c0, %c0_0, %c0_1, %c0_2] : memref<1x16x16x32xbf16, #tpu.memory_space<vmem>>, vector<1x16x16x32xbf16>
    %1 = vector.shape_cast %0 : vector<1x16x16x32xbf16> to vector<16x16x32xbf16>
    %2 = vector.shape_cast %1 : vector<16x16x32xbf16> to vector<256x32xbf16>
    %c0_3 = arith.constant 0 : index
    %c0_4 = arith.constant 0 : index
    %3 = vector.load %arg4[%c0_3, %c0_4] : memref<32x32xbf16, #tpu.memory_space<vmem>>, vector<32x32xbf16>
    %cst = arith.constant dense<0.000000e+00> : vector<256x32xf32>
    %4 = tpu.matmul %2, %3, %cst {dimension_numbers = #tpu.dot_dimension_numbers<[1], [0], [0], [1], [0, 0, 1, 1], [], []>} : vector<256x32xbf16>, vector<32x32xbf16>, vector<256x32xf32> -> vector<256x32xf32>
    %c0_5 = arith.constant 0 : index
    %c0_6 = arith.constant 0 : index
    %5 = vector.load %arg5[%c0_5, %c0_6] : memref<1x32xf32, #tpu.memory_space<vmem>>, vector<1x32xf32>
    %6 = vector.broadcast %5 : vector<1x32xf32> to vector<256x32xf32>
    %7 = arith.addf %4, %6 : vector<256x32xf32>
    %cst_7 = arith.constant 5.000000e-01 : f32
    %8 = vector.broadcast %cst_7 : f32 to vector<256x32xf32>
    %9 = arith.mulf %8, %7 : vector<256x32xf32>
    %cst_8 = arith.constant 4.471500e-02 : f32
    %10 = vector.broadcast %cst_8 : f32 to vector<256x32xf32>
    %11 = arith.mulf %10, %7 : vector<256x32xf32>
    %12 = arith.mulf %11, %7 : vector<256x32xf32>
    %13 = arith.mulf %12, %7 : vector<256x32xf32>
    %14 = arith.addf %7, %13 : vector<256x32xf32>
    %cst_9 = arith.constant 0.797884583 : f32
    %15 = vector.broadcast %cst_9 : f32 to vector<256x32xf32>
    %16 = arith.mulf %15, %14 : vector<256x32xf32>
    %17 = math.tanh %16 : vector<256x32xf32>
    %cst_10 = arith.constant 1.000000e+00 : f32
    %18 = vector.broadcast %cst_10 : f32 to vector<256x32xf32>
    %19 = arith.addf %18, %17 : vector<256x32xf32>
    %20 = arith.mulf %9, %19 : vector<256x32xf32>
    %c0_11 = arith.constant 0 : index
    %c0_12 = arith.constant 0 : index
    %21 = vector.load %arg6[%c0_11, %c0_12] : memref<1x32xf32, #tpu.memory_space<vmem>>, vector<1x32xf32>
    %22 = vector.broadcast %21 : vector<1x32xf32> to vector<256x32xf32>
    %23 = arith.mulf %20, %22 : vector<256x32xf32>
    %cst_13 = arith.constant dense<0.000000e+00> : vector<256xf32>
    %24 = vector.multi_reduction <add>, %23, %cst_13 [1] : vector<256x32xf32> to vector<256xf32>
    %25 = vector.shape_cast %24 : vector<256xf32> to vector<256x1xf32>
    %c0_14 = arith.constant 0 : index
    %c0_15 = arith.constant 0 : index
    %26 = vector.load %arg7[%c0_14, %c0_15] : memref<1x1xf32, #tpu.memory_space<vmem>>, vector<1x1xf32>
    %27 = vector.broadcast %26 : vector<1x1xf32> to vector<256x1xf32>
    %28 = arith.addf %25, %27 : vector<256x1xf32>
    %c0_16 = arith.constant 0 : index
    %c0_17 = arith.constant 0 : index
    %c0_18 = arith.constant 0 : index
    %c0_19 = arith.constant 0 : index
    %29 = vector.load %arg3[%c0_16, %c0_17, %c0_18, %c0_19] : memref<1x16x16x3xf32, #tpu.memory_space<vmem>>, vector<1x16x16x3xf32>
    %30 = vector.shape_cast %29 : vector<1x16x16x3xf32> to vector<16x16x3xf32>
    %31 = vector.shape_cast %30 : vector<16x16x3xf32> to vector<256x3xf32>
    %32 = vector.broadcast %28 : vector<256x1xf32> to vector<256x3xf32>
    %33 = arith.mulf %32, %31 : vector<256x3xf32>
    %c0_20 = arith.constant 0 : index
    %c0_21 = arith.constant 0 : index
    %34 = vector.load %arg8[%c0_20, %c0_21] : memref<16x256xf32, #tpu.memory_space<vmem>>, vector<16x256xf32>
    %cst_22 = arith.constant dense<0.000000e+00> : vector<16x3xf32>
    %35 = tpu.matmul %34, %33, %cst_22 {dimension_numbers = #tpu.dot_dimension_numbers<[1], [0], [0], [1], [0, 0, 1, 1], [], []>} : vector<16x256xf32>, vector<256x3xf32>, vector<16x3xf32> -> vector<16x3xf32>
    %c0_23 = arith.constant 0 : index
    %c0_24 = arith.constant 0 : index
    %c0_25 = arith.constant 0 : index
    %36 = vector.load %arg9[%c0_23, %c0_24, %c0_25] : memref<1x16x3xf32, #tpu.memory_space<vmem>>, vector<1x16x3xf32>
    %37 = vector.shape_cast %36 : vector<1x16x3xf32> to vector<16x3xf32>
    %38 = vector.shape_cast %35 : vector<16x3xf32> to vector<1x16x3xf32>
    tpu.vector_store %arg9[%c0_23, %c0_24, %c0_25], %38 {strides = array<i32>} : memref<1x16x3xf32, #tpu.memory_space<vmem>>, vector<1x16x3xf32>,
    return
  }
  func.func @transform_0(%arg0: i32, %arg1: i32) -> (i32, i32, i32, i32) {
    %c0_i32 = arith.constant 0 : i32
    %c0_i32_0 = arith.constant 0 : i32
    %c0_i32_1 = arith.constant 0 : i32
    return %arg0, %arg1, %c0_i32, %c0_i32_0 : i32, i32, i32, i32
  }
  func.func @transform_1(%arg0: i32, %arg1: i32) -> (i32, i32, i32, i32) {
    %c0_i32 = arith.constant 0 : i32
    %c0_i32_0 = arith.constant 0 : i32
    %c0_i32_1 = arith.constant 0 : i32
    return %arg0, %arg1, %c0_i32, %c0_i32_0 : i32, i32, i32, i32
  }
  func.func @transform_2(%arg0: i32, %arg1: i32) -> (i32, i32) {
    %c0_i32 = arith.constant 0 : i32
    %c0_i32_0 = arith.constant 0 : i32
    %c0_i32_1 = arith.constant 0 : i32
    return %c0_i32, %c0_i32_0 : i32, i32
  }
  func.func @transform_3(%arg0: i32, %arg1: i32) -> (i32, i32) {
    %c0_i32 = arith.constant 0 : i32
    %c0_i32_0 = arith.constant 0 : i32
    %c0_i32_1 = arith.constant 0 : i32
    return %c0_i32, %c0_i32_0 : i32, i32
  }
  func.func @transform_4(%arg0: i32, %arg1: i32) -> (i32, i32) {
    %c0_i32 = arith.constant 0 : i32
    %c0_i32_0 = arith.constant 0 : i32
    %c0_i32_1 = arith.constant 0 : i32
    return %c0_i32, %c0_i32_0 : i32, i32
  }
  func.func @transform_5(%arg0: i32, %arg1: i32) -> (i32, i32) {
    %c0_i32 = arith.constant 0 : i32
    %c0_i32_0 = arith.constant 0 : i32
    %c0_i32_1 = arith.constant 0 : i32
    return %c0_i32, %c0_i32_0 : i32, i32
  }
  func.func @transform_6(%arg0: i32, %arg1: i32) -> (i32, i32) {
    %c0_i32 = arith.constant 0 : i32
    %c0_i32_0 = arith.constant 0 : i32
    %c0_i32_1 = arith.constant 0 : i32
    return %c0_i32, %c0_i32_0 : i32, i32
  }
  func.func @transform_7(%arg0: i32, %arg1: i32) -> (i32, i32, i32) {
    %c0_i32 = arith.constant 0 : i32
    %c0_i32_0 = arith.constant 0 : i32
    return %arg0, %arg1, %c0_i32 : i32, i32, i32
  }
}

</mosaic_0001>

<bundles_post_ra>
// kernel: tpu_custom_call.1
= control target key start
LH: loop header
LB: loop body
LE: loop exit
PB: predicated region body
PF: predicated region fallthrough
CT: control target
= control target key end

     0   :  { %s1766_s26 = smov 0   ;;  %s1768_s27 = smov 0   ;;  %s2221_s0 = inlined_call_operand.vmem [shape: bf16[2,16,16,32], index: 0, kind: input, shape index: {}]   ;;  %s2222_s1 = inlined_call_operand.vmem [shape: f32[2,16,16,3], index: 1, kind: input, shape index: {}]   ;;  %s2223_s2 = inlined_call_operand.vmem [shape: bf16[32,32], index: 2, kind: input, shape index: {}]   ;;  %s2224_s3 = inlined_call_operand.vmem [shape: f32[1,32], index: 3, kind: input, shape index: {}]   ;;  %s2225_s4 = inlined_call_operand.vmem [shape: f32[1,32], index: 4, kind: input, shape index: {}]   ;;  %s2226_s5 = inlined_call_operand.<no memory space> [shape: f32[1,1], index: 5, kind: input, shape index: {}]   ;;  %s2227_s6 = inlined_call_operand.vmem [shape: f32[16,256], index: 6, kind: input, shape index: {}]   ;;  %s2228_s7 = inlined_call_operand.vmem [shape: f32[2,16,3], index: 7, kind: output, shape index: {}]  }
   0x1   :  { %v12_v0 = vstv %s2226_s5  ;;  %s1770_s28 = smov 0  }
   0x2   :  { %13 = vst [vmem:[#allocation2] sm:$0x1] %v12_v0 }
   0x3 LB: > { %s31_s5 = sadd.s32 1, %s1716_s27  ;;  %p1481_p0 = scmp.ge.s32.totalorder %s1720_s28, 1  ;;  %s1720_s28 = sphi %s1770_s28, %s19_s28   ;;  %s1716_s27 = sphi %s1768_s27, %s2230_s27   ;;  %s1712_s26 = sphi %s1766_s26, %s2229_s26  }
   0x4   : > { %p33_p1 = scmp.ge.s32.totalorder %s31_s5, 2  ;;  %p279_p2 = scmp.lt.s32.totalorder %s1720_s28, 3 }
   0x6   : > { %s2232_s5 = smov (%p33_p1, %s31_s5), 0  ;;  %p280_p3 = pnand %p1481_p0, %p279_p2 }
   0x7   : > { %p331_p4 = scmp.lt.s32.totalorder (!%p280_p3), %s1712_s26, 1 }
   0x8   : > { %283 = sbr.rel (%p280_p3) target bundleno = 673 (0x2a1), region = 48 }
   0xd   : > { %v1598_v1 = vld [vmem:[%s2223_s2 + $0x8] sm:$0xff]  ;;  %v1597_v2 = vld [vmem:[%s2223_s2] sm:$0xff]  ;;  %s2234_s26 = smov (!%p331_p4, %s1712_s26), 1  ;;  %vm495_vm0 = vcmask 261120   ;;  %vm1363_vm1 = vcmask 23552  }
   0xe   : > { %550 = vmatpush.bf16.msra.mxu0 %v1598_v1  ;;  %1599 = vmatpush.bf16.msra.mxu1 %v1598_v1  ;;  %s1578_s10 = sshll.u32 %s2234_s26, 7  ;;  %v1833_v19 = vld [vmem:[%s2224_s3] ss:$0 sm:$0xff]  ;;  %s1579_s18 = sshll.u32 %s2234_s26, 8 }
   0xf   : > { %1600 = vmatpush.bf16.msra.mxu3 %v1598_v1  ;;  %s1796_s13 = scalar_lea.vmem %s2221_s0, %s1578_s10  ;;  %s2149_s21 = scalar_lea.vmem %s2222_s1, %s1579_s18 }
  0x10   : > { %v1581_v3 = vld [vmem:[%s1796_s13] sm:$0xff]  ;;  %v1587_v4 = vld [vmem:[%s1796_s13 + $0x30] sm:$0xff]  ;;  %v1592_v5 = vld [vmem:[%s1796_s13 + $0x58] sm:$0xff]  ;;  %s1580_s10 = sshll.u32 %s2234_s26, 4 }
  0x11   : > { %v1582_v6 = vld [vmem:[%s1796_s13 + $0x8] sm:$0xff]  ;;  %v1588_v7 = vld [vmem:[%s1796_s13 + $0x38] sm:$0xff]  ;;  %v1593_v8 = vld [vmem:[%s1796_s13 + $0x60] sm:$0xff] }
  0x12   : > { %551 = vmatpush.bf16.msra.mxu0 %v1597_v2  ;;  %1601 = vmatpush.bf16.msra.mxu1 %v1597_v2  ;;  %v1583_v9 = vld [vmem:[%s1796_s13 + $0x10] sm:$0xff]  ;;  %v1589_v10 = vld [vmem:[%s1796_s13 + $0x40] sm:$0xff]  ;;  %v1594_v11 = vld [vmem:[%s1796_s13 + $0x68] sm:$0xff] }
  0x13   : > { %1602 = vmatpush.bf16.msra.mxu3 %v1597_v2  ;;  %v1584_v12 = vld [vmem:[%s1796_s13 + $0x18] sm:$0xff]  ;;  %v1590_v13 = vld [vmem:[%s1796_s13 + $0x48] sm:$0xff]  ;;  %v1595_v14 = vld [vmem:[%s1796_s13 + $0x70] sm:$0xff] }
  0x14   : > { %v1585_v15 = vld [vmem:[%s1796_s13 + $0x20] sm:$0xff]  ;;  %v1591_v16 = vld [vmem:[%s1796_s13 + $0x50] sm:$0xff]  ;;  %v1596_v17 = vld [vmem:[%s1796_s13 + $0x78] sm:$0xff] }
  0x15   : > { %1560 = vmatmul.msk.bf16.vlgmr.msra.gmra.mxu0 %vm495_vm0, %v1581_v3  ;;  %1566 = vmatmul.msk.bf16.vlgmr.msra.gmra.mxu1 %vm495_vm0, %v1587_v4  ;;  %v1586_v18 = vld [vmem:[%s1796_s13 + $0x28] sm:$0xff]  ;;  %v1852_v4 = vld [vmem:[%s2225_s4] ss:$0 sm:$0xff]  ;;  %s360_s13 = scalar_lea.vmem %s2228_s7, %s1580_s10 }
  0x16   : > { %1571 = vmatmul.msk.bf16.vlgmr.msra.gmra.mxu3 %vm495_vm0, %v1592_v5 }
  0x25   : > { %1561 = vmatmul.msk.bf16.gmra.mxu0 %vm495_vm0, %v1582_v6  ;;  %1567 = vmatmul.msk.bf16.gmra.mxu1 %vm495_vm0, %v1588_v7 }
  0x26   : > { %1572 = vmatmul.msk.bf16.gmra.mxu3 %vm495_vm0, %v1593_v8 }
  0x35   : > { %1562 = vmatmul.msk.bf16.gmra.mxu0 %vm495_vm0, %v1583_v9  ;;  %1568 = vmatmul.msk.bf16.gmra.mxu1 %vm495_vm0, %v1589_v10 }
  0x36   : > { %1573 = vmatmul.msk.bf16.gmra.mxu3 %vm495_vm0, %v1594_v11 }
  0x45   : > { %1563 = vmatmul.msk.bf16.gmra.mxu0 %vm495_vm0, %v1584_v12  ;;  %1569 = vmatmul.msk.bf16.gmra.mxu1 %vm495_vm0, %v1590_v13 }
  0x46   : > { %1574 = vmatmul.msk.bf16.gmra.mxu3 %vm495_vm0, %v1595_v14 }
  0x55   : > { %1564 = vmatmul.msk.bf16.gmra.mxu0 %vm495_vm0, %v1585_v15  ;;  %1570 = vmatmul.msk.bf16.gmra.mxu1 %vm495_vm0, %v1591_v16 }
  0x56   : > { %1575 = vmatmul.msk.bf16.gmra.mxu3 %vm495_vm0, %v1596_v17 }
  0x65   : > { %1565 = vmatmul.msk.bf16.gmra.mxu0 %vm495_vm0, %v1586_v18 }
  0x92   : > { %v553_v20 = vpop.f32.mrf.mxu0  ;;  %v583_v21 = vpop.f32.mrf.mxu1 }
  0x93   : > { %v554_v22 = vadd.f32 %v1833_v19, %v553_v20  ;;  %v584_v23 = vadd.f32 %v1833_v19, %v583_v21 }
  0x95   : > { %v665_v24 = vmul.f32 0.044715, %v554_v22  ;;  %v677_v25 = vmul.f32 0.044715, %v584_v23  ;;  %v633_v59 = vmul.f32 0.5, %v554_v22  ;;  %v645_v13 = vmul.f32 0.5, %v584_v23 }
  0x97   : > { %v709_v26 = vmul.f32 %v677_v25, %v584_v23  ;;  %v697_v27 = vmul.f32 %v665_v24, %v554_v22 }
  0x99   : > { %v608_v28 = vpop.f32.mrf.mxu3  ;;  %v729_v29 = vmul.f32 %v697_v27, %v554_v22  ;;  %v741_v30 = vmul.f32 %v709_v26, %v584_v23 }
  0x9a   : > { %v609_v31 = vadd.f32 %v1833_v19, %v608_v28  ;;  %v555_v32 = vpop.f32.mrf.mxu0  ;;  %v585_v33 = vpop.f32.mrf.mxu1 }
  0x9b   : > { %v556_v34 = vadd.f32 %v1833_v19, %v555_v32  ;;  %v586_v35 = vadd.f32 %v1833_v19, %v585_v33  ;;  %v761_v36 = vadd.f32 %v729_v29, %v554_v22  ;;  %v773_v37 = vadd.f32 %v741_v30, %v584_v23 }
  0x9c   : > { %v687_v38 = vmul.f32 0.044715, %v609_v31  ;;  %v655_v12 = vmul.f32 0.5, %v609_v31 }
  0x9d   : > { %v666_v39 = vmul.f32 0.044715, %v556_v34  ;;  %v678_v40 = vmul.f32 0.044715, %v586_v35  ;;  %v793_v41 = vmul.f32 0.7978846, %v761_v36 }
  0x9e   : > { %v719_v42 = vmul.f32 %v687_v38, %v609_v31  ;;  %v805_v43 = vmul.f32 0.7978846, %v773_v37  ;;  %v646_v20 = vmul.f32 0.5, %v586_v35  ;;  %v634_v25 = vmul.f32 0.5, %v556_v34 }
  0x9f   : > { %v698_v44 = vmul.f32 %v666_v39, %v556_v34  ;;  %v710_v45 = vmul.f32 %v678_v40, %v586_v35  ;;  %1634 = vtanh.f32 %v793_v41 }
  0xa0   : > { %v751_v46 = vmul.f32 %v719_v42, %v609_v31  ;;  %1636 = vtanh.f32 %v805_v43 }
  0xa1   : > { %v610_v47 = vpop.f32.mrf.mxu3  ;;  %v742_v48 = vmul.f32 %v710_v45, %v586_v35  ;;  %v730_v49 = vmul.f32 %v698_v44, %v556_v34 }
  0xa2   : > { %v611_v50 = vadd.f32 %v1833_v19, %v610_v47  ;;  %v558_v51 = vpop.f32.mrf.mxu0  ;;  %v588_v52 = vpop.f32.mrf.mxu1  ;;  %v783_v53 = vadd.f32 %v751_v46, %v609_v31 }
  0xa3   : > { %v1842_v54 = vadd.f32 %v1833_v19, %v558_v51  ;;  %v1845_v55 = vadd.f32 %v1833_v19, %v588_v52  ;;  %v774_v56 = vadd.f32 %v742_v48, %v586_v35  ;;  %v762_v57 = vadd.f32 %v730_v49, %v556_v34 }
  0xa4   : > { %v688_v58 = vmul.f32 0.044715, %v611_v50  ;;  %v815_v60 = vmul.f32 0.7978846, %v783_v53  ;;  %v656_v35 = vmul.f32 0.5, %v611_v50 }
  0xa5   : > { %v1635_v61 = vpop.eup %1634  ;;  %v667_v62 = vmul.f32 0.044715, %v1842_v54  ;;  %v679_v63 = vmul.f32 0.044715, %v1845_v55  ;;  %v806_v0 = vmul.f32 0.7978846, %v774_v56 }
  0xa6   : > { %v1637_v1 = vpop.eup %1636  ;;  %v720_v2 = vmul.f32 %v688_v58, %v611_v50  ;;  %v857_v3 = vadd.f32 1.0, %v1635_v61  ;;  %1638 = vtanh.f32 %v815_v60  ;;  %v794_v5 = vmul.f32 0.7978846, %v762_v57 }
  0xa7   : > { %v699_v6 = vmul.f32 %v667_v62, %v1842_v54  ;;  %v869_v7 = vadd.f32 1.0, %v1637_v1  ;;  %1640 = vtanh.f32 %v806_v0  ;;  %v711_v10 = vmul.f32 %v679_v63, %v1845_v55 }
  0xa8   : > { %v889_v8 = vmul.f32 %v857_v3, %v633_v59  ;;  %1642 = vtanh.f32 %v794_v5  ;;  %v752_v9 = vmul.f32 %v720_v2, %v611_v50  ;;  %v635_v49 = vmul.f32 0.5, %v1842_v54 }
  0xa9   : > { %v613_v11 = vpop.f32.mrf.mxu3  ;;  %v731_v14 = vmul.f32 %v699_v6, %v1842_v54  ;;  %v901_v24 = vmul.f32 %v869_v7, %v645_v13  ;;  %v743_v36 = vmul.f32 %v711_v10, %v1845_v55  ;;  %v1871_v51 = vmul.f32 0.5, %v1845_v55 }
  0xaa   : > { %v614_v15 = vadd.f32 %v1833_v19, %v613_v11  ;;  %v560_v16 = vpop.f32.mrf.mxu0  ;;  %v590_v17 = vpop.f32.mrf.mxu1  ;;  %v925_v18 = vmul.f32 %v1852_v4, %v889_v8  ;;  %v784_v21 = vadd.f32 %v752_v9, %v611_v50 }
  0xab   : > { %v591_v22 = vadd.f32 %v1833_v19, %v590_v17  ;;  %v763_v26 = vadd.f32 %v731_v14, %v1842_v54  ;;  %v1862_v23 = vadd.f32 %v1833_v19, %v560_v16  ;;  %v937_v42 = vmul.f32 %v1852_v4, %v901_v24 }
  0xac   : > { %v1639_v27 = vpop.eup %1638  ;;  %v689_v28 = vmul.f32 0.044715, %v614_v15  ;;  %v957_v29 = vsel %vm495_vm0, %v925_v18, 0.0  ;;  %v816_v30 = vmul.f32 0.7978846, %v784_v21  ;;  %v775_v59 = vadd.f32 %v743_v36, %v1845_v55 }
  0xad   : > { %v1641_v31 = vpop.eup %1640  ;;  %v680_v32 = vmul.f32 0.044715, %v591_v22  ;;  %958 = vadd.xlane.f32.xlu0 %v957_v29  ;;  %v879_v33 = vadd.f32 1.0, %v1639_v27  ;;  %v795_v39 = vmul.f32 0.7978846, %v763_v26  ;;  %v993_v62 = vsel %vm495_vm0, %v937_v42, 0.0 }
  0xae   : > { %v1643_v37 = vpop.eup %1642  ;;  %v870_v38 = vadd.f32 1.0, %v1641_v31  ;;  %v721_v34 = vmul.f32 %v689_v28, %v614_v15  ;;  %1644 = vtanh.f32 %v816_v30  ;;  %v668_v44 = vmul.f32 0.044715, %v1862_v23 }
  0xaf   : > { %v712_v40 = vmul.f32 %v680_v32, %v591_v22  ;;  %v911_v41 = vmul.f32 %v879_v33, %v655_v12  ;;  %v858_v43 = vadd.f32 1.0, %v1643_v37  ;;  %1646 = vtanh.f32 %v795_v39 }
  0xb0   : > { %v902_v45 = vmul.f32 %v870_v38, %v646_v20  ;;  %v753_v46 = vmul.f32 %v721_v34, %v614_v15  ;;  %v700_v0 = vmul.f32 %v668_v44, %v1862_v23  ;;  %v657_v6 = vmul.f32 0.5, %v614_v15 }
  0xb1   : > { %v615_v47 = vpop.f32.mrf.mxu3  ;;  %v947_v48 = vmul.f32 %v1852_v4, %v911_v41  ;;  %v744_v50 = vmul.f32 %v712_v40, %v591_v22  ;;  %v890_v57 = vmul.f32 %v858_v43, %v634_v25  ;;  %v807_v11 = vmul.f32 0.7978846, %v775_v59 }
  0xb2   : > { %v1874_v52 = vadd.f32 %v1833_v19, %v615_v47  ;;  %v563_v53 = vpop.f32.mrf.mxu0  ;;  %v593_v56 = vpop.f32.mrf.mxu1  ;;  %v785_v58 = vadd.f32 %v753_v46, %v614_v15  ;;  %v938_v1 = vmul.f32 %v1852_v4, %v902_v45  ;;  %v648_v16 = vmul.f32 0.5, %v591_v22 }
  0xb3   : > { %v564_v60 = vadd.f32 %v1833_v19, %v563_v53  ;;  %v1879_v61 = vadd.f32 %v1833_v19, %v593_v56  ;;  %v1023_v54 = vsel %vm495_vm0, %v947_v48, 0.0  ;;  %v776_v3 = vadd.f32 %v744_v50, %v591_v22 }
  0xb4   : > { %v1645_v63 = vpop.eup %1644  ;;  %1024 = vadd.xlane.f32.xlu1 %v1023_v54  ;;  %v817_v2 = vmul.f32 0.7978846, %v785_v58  ;;  %v690_v5 = vmul.f32 0.044715, %v1874_v52  ;;  %v926_v9 = vmul.f32 %v1852_v4, %v890_v57  ;;  %v996_v17 = vsel %vm495_vm0, %v938_v1, 0.0 }
  0xb5   : > { %v669_v55 = vmul.f32 0.044715, %v564_v60  ;;  %994 = vadd.xlane.f32.xlu0 %v993_v62  ;;  %v880_v7 = vadd.f32 1.0, %v1645_v63  ;;  %v1647_v8 = vpop.eup %1646  ;;  %v808_v10 = vmul.f32 0.7978846, %v776_v3  ;;  %v1890_v18 = vmul.f32 0.5, %v1862_v23 }
  0xb6   : > { %1648 = vtanh.f32 %v817_v2  ;;  %v681_v13 = vmul.f32 0.044715, %v1879_v61  ;;  %v859_v14 = vadd.f32 1.0, %v1647_v8  ;;  %v732_v15 = vmul.f32 %v700_v0, %v1862_v23 }
  0xb7   : > { %v701_v12 = vmul.f32 %v669_v55, %v564_v60  ;;  %1650 = vtanh.f32 %v808_v10  ;;  %v722_v20 = vmul.f32 %v690_v5, %v1874_v52  ;;  %v912_v24 = vmul.f32 %v880_v7, %v656_v35 }
  0xb8   : > { %1652 = vtanh.f32 %v807_v11  ;;  %v960_v22 = vsel %vm495_vm0, %v926_v9, 0.0  ;;  %v891_v29 = vmul.f32 %v859_v14, %v635_v49  ;;  %v764_v30 = vadd.f32 %v732_v15, %v1862_v23 }
  0xb9   : > { %v618_v21 = vpop.f32.mrf.mxu3  ;;  %v733_v25 = vmul.f32 %v701_v12, %v564_v60  ;;  %v1898_v31 = vmul.f32 %v681_v13, %v1879_v61  ;;  %v1901_v33 = vmul.f32 0.5, %v564_v60  ;;  %v1904_v35 = vmul.f32 0.5, %v1874_v52 }
  0xba   : > { %v619_v26 = vadd.f32 %v1833_v19, %v618_v21  ;;  %v565_v27 = vpop.f32.mrf.mxu0  ;;  %v595_v28 = vpop.f32.mrf.mxu1  ;;  %v796_v39 = vmul.f32 0.7978846, %v764_v30  ;;  %v948_v41 = vmul.f32 %v1852_v4, %v912_v24  ;;  %v754_v42 = vmul.f32 %v722_v20, %v1874_v52 }
  0xbb   : > { %v566_v32 = vadd.f32 %v1833_v19, %v565_v27  ;;  %v1907_v38 = vadd.f32 %v1833_v19, %v595_v28  ;;  %v765_v34 = vadd.f32 %v733_v25, %v564_v60  ;;  %v927_v45 = vmul.f32 %v1852_v4, %v891_v29 }
  0xbc   : > { %v1649_v36 = vpop.eup %1648  ;;  %v691_v37 = vmul.f32 0.044715, %v619_v26  ;;  %997 = vadd.xlane.f32.xlu1 %v996_v17  ;;  %1654 = vtanh.f32 %v796_v39  ;;  %v1913_v53 = vmul.f32 0.5, %v1879_v61  ;;  %v786_v63 = vadd.f32 %v754_v42, %v1874_v52 }
  0xbd   : > { %v670_v40 = vmul.f32 0.044715, %v566_v32  ;;  %961 = vadd.xlane.f32.xlu0 %v960_v22  ;;  %v881_v23 = vadd.f32 1.0, %v1649_v36  ;;  %v1651_v43 = vpop.eup %1650  ;;  %v797_v46 = vmul.f32 0.7978846, %v765_v34  ;;  %v963_v3 = vsel %vm495_vm0, %v927_v45, 0.0 }
  0xbe   : > { %v723_v44 = vmul.f32 %v691_v37, %v619_v26  ;;  %v1653_v47 = vpop.eup %1652  ;;  %v872_v50 = vadd.f32 1.0, %v1651_v43  ;;  %v682_v56 = vmul.f32 0.044715, %v1907_v38  ;;  %v1026_v5 = vsel %vm495_vm0, %v948_v41, 0.0 }
  0xbf   : > { %v702_v48 = vmul.f32 %v670_v40, %v566_v32  ;;  %v913_v49 = vmul.f32 %v881_v23, %v657_v6  ;;  %v871_v57 = vadd.f32 1.0, %v1653_v47  ;;  %1656 = vtanh.f32 %v797_v46 }
  0xc0   : > { %v755_v58 = vmul.f32 %v723_v44, %v619_v26  ;;  %v904_v54 = vmul.f32 %v872_v50, %v648_v16  ;;  %v714_v10 = vmul.f32 %v682_v56, %v1907_v38  ;;  %v659_v17 = vmul.f32 0.5, %v619_v26 }
  0xc1   : > { %v620_v59 = vpop.f32.mrf.mxu3  ;;  %v949_v60 = vmul.f32 %v1852_v4, %v913_v49  ;;  %v734_v62 = vmul.f32 %v702_v48, %v566_v32  ;;  %v903_v9 = vmul.f32 %v871_v57, %v1871_v51  ;;  %v818_v15 = vmul.f32 0.7978846, %v786_v63 }
  0xc2   : > { %v621_v0 = vadd.f32 %v1833_v19, %v620_v59  ;;  %v568_v1 = vpop.f32.mrf.mxu0  ;;  %v598_v2 = vpop.f32.mrf.mxu1  ;;  %v787_v55 = vadd.f32 %v755_v58, %v619_v26  ;;  %v940_v14 = vmul.f32 %v1852_v4, %v904_v54  ;;  %v638_v22 = vmul.f32 0.5, %v566_v32 }
  0xc3   : > { %v1922_v6 = vadd.f32 %v1833_v19, %v568_v1  ;;  %v1925_v7 = vadd.f32 %v1833_v19, %v598_v2  ;;  %v1029_v8 = vsel %vm495_vm0, %v949_v60, 0.0  ;;  %v1655_v52 = vpop.eup %1654  ;;  %v766_v13 = vadd.f32 %v734_v62, %v566_v32 }
  0xc4   : > { %v692_v11 = vmul.f32 0.044715, %v621_v0  ;;  %1030 = vadd.xlane.f32.xlu2 %v1029_v8  ;;  %964 = vadd.xlane.f32.xlu1 %v963_v3  ;;  %v819_v12 = vmul.f32 0.7978846, %v787_v55  ;;  %v860_v16 = vadd.f32 1.0, %v1655_v52  ;;  %v939_v27 = vmul.f32 %v1852_v4, %v903_v9 }
  0xc5   : > { %1027 = vadd.xlane.f32.xlu0 %v1026_v5  ;;  %v1657_v20 = vpop.eup %1656  ;;  %v671_v24 = vmul.f32 0.044715, %v1922_v6  ;;  %v798_v51 = vmul.f32 0.7978846, %v766_v13  ;;  %v683_v25 = vmul.f32 0.044715, %v1925_v7  ;;  %v746_v30 = vmul.f32 %v714_v10, %v1907_v38 }
  0xc6   : > { %v724_v21 = vmul.f32 %v692_v11, %v621_v0  ;;  %1658 = vtanh.f32 %v819_v12  ;;  %v861_v28 = vadd.f32 1.0, %v1657_v20  ;;  %v1935_v29 = vmul.f32 0.5, %v1907_v38 }
  0xc7   : > { %1660 = vtanh.f32 %v798_v51  ;;  %v892_v34 = vmul.f32 %v860_v16, %v1890_v18  ;;  %v745_v39 = vmul.f32 %v1898_v31, %v1879_v61  ;;  %v703_v40 = vmul.f32 %v671_v24, %v1922_v6 }
  0xc8   : > { %v756_v26 = vmul.f32 %v724_v21, %v621_v0  ;;  %v893_v37 = vmul.f32 %v861_v28, %v1901_v33  ;;  %1662 = vtanh.f32 %v818_v15  ;;  %v1002_v41 = vsel %vm495_vm0, %v940_v14, 0.0 }
  0xc9   : > { %v623_v36 = vpop.f32.mrf.mxu3  ;;  %v778_v42 = vadd.f32 %v746_v30, %v1907_v38  ;;  %v715_v44 = vmul.f32 %v683_v25, %v1925_v7  ;;  %v999_v33 = vsel %vm495_vm0, %v939_v27, 0.0  ;;  %v777_v38 = vadd.f32 %v745_v39, %v1879_v61 }
  0xca   : > { %v570_v23 = vpop.f32.mrf.mxu0  ;;  %v600_v32 = vpop.f32.mrf.mxu1  ;;  %v788_v43 = vadd.f32 %v756_v26, %v621_v0  ;;  %v1947_v45 = vadd.f32 %v1833_v19, %v623_v36  ;;  %v929_v49 = vmul.f32 %v1852_v4, %v893_v37  ;;  %v928_v50 = vmul.f32 %v1852_v4, %v892_v34 }
  0xcb   : > { %v1950_v18 = vadd.f32 %v1833_v19, %v570_v23  ;;  %v1954_v46 = vadd.f32 %v1833_v19, %v600_v32  ;;  %v810_v47 = vmul.f32 0.7978846, %v778_v42  ;;  %v660_v57 = vmul.f32 0.5, %v621_v0 }
  0xcc   : > { %v1659_v31 = vpop.eup %1658  ;;  %1003 = vadd.xlane.f32.xlu2 %v1002_v41  ;;  %1000 = vadd.xlane.f32.xlu1 %v999_v33  ;;  %v820_v48 = vmul.f32 0.7978846, %v788_v43  ;;  %v809_v60 = vmul.f32 0.7978846, %v777_v38  ;;  %v735_v54 = vmul.f32 %v703_v40, %v1922_v6  ;;  %v693_v63 = vmul.f32 0.044715, %v1947_v45 }
  0xcd   : > { %v883_v56 = vadd.f32 1.0, %v1659_v31  ;;  %v1661_v58 = vpop.eup %1660  ;;  %v672_v59 = vmul.f32 0.044715, %v1950_v18  ;;  %1664 = vtanh.f32 %v810_v47  ;;  %v1963_v61 = vmul.f32 0.5, %v1922_v6 }
  0xce   : > { %v1663_v62 = vpop.eup %1662  ;;  %v862_v2 = vadd.f32 1.0, %v1661_v58  ;;  %v684_v3 = vmul.f32 0.044715, %v1954_v46  ;;  %1666 = vtanh.f32 %v820_v48  ;;  %v767_v0 = vadd.f32 %v735_v54, %v1922_v6 }
  0xcf   : > { %v915_v1 = vmul.f32 %v883_v56, %v659_v17  ;;  %v882_v5 = vadd.f32 1.0, %v1663_v62  ;;  %v966_v8 = vsel %vm495_vm0, %v928_v50, 0.0  ;;  %1668 = vtanh.f32 %v809_v60 }
  0xd0   : > { %v747_v52 = vmul.f32 %v715_v44, %v1925_v7  ;;  %v704_v10 = vmul.f32 %v672_v59, %v1950_v18  ;;  %v969_v13 = vsel %vm495_vm0, %v929_v49, 0.0  ;;  %v894_v14 = vmul.f32 %v862_v2, %v638_v22 }
  0xd1   : > { %v625_v55 = vpop.f32.mrf.mxu3  ;;  %v951_v9 = vmul.f32 %v1852_v4, %v915_v1  ;;  %v799_v16 = vmul.f32 0.7978846, %v767_v0  ;;  %v725_v17 = vmul.f32 %v693_v63, %v1947_v45  ;;  %v914_v20 = vmul.f32 %v882_v5, %v1904_v35 }
  0xd2   : > { %v573_v11 = vpop.f32.mrf.mxu0  ;;  %v603_v12 = vpop.f32.mrf.mxu1  ;;  %v1979_v24 = vmul.f32 %v684_v3, %v1954_v46  ;;  %v1982_v51 = vadd.f32 %v1833_v19, %v625_v55  ;;  %v779_v25 = vadd.f32 %v747_v52, %v1925_v7  ;;  %v651_v35 = vmul.f32 0.5, %v1925_v7 }
  0xd3   : > { %v1974_v6 = vadd.f32 %v1833_v19, %v573_v11  ;;  %v1035_v15 = vsel %vm495_vm0, %v951_v9, 0.0  ;;  %v1665_v21 = vpop.eup %1664  ;;  %1670 = vtanh.f32 %v799_v16  ;;  %v1987_v28 = vadd.f32 %v1833_v19, %v603_v12 }
  0xd4   : > { %970 = vadd.xlane.f32.xlu2 %v969_v13  ;;  %967 = vadd.xlane.f32.xlu1 %v966_v8  ;;  %v874_v22 = vadd.f32 1.0, %v1665_v21  ;;  %v1667_v30 = vpop.eup %1666  ;;  %v930_v26 = vmul.f32 %v1852_v4, %v894_v14  ;;  %v811_v36 = vmul.f32 0.7978846, %v779_v25  ;;  %v1992_v37 = vmul.f32 0.5, %v1950_v18 }
  0xd5   : > { %v673_v27 = vmul.f32 0.044715, %v1974_v6  ;;  %1036 = vadd.xlane.f32.xlu0 %v1035_v15  ;;  %v736_v34 = vmul.f32 %v704_v10, %v1950_v18  ;;  %v1669_v39 = vpop.eup %1668  ;;  %v950_v23 = vmul.f32 %v1852_v4, %v914_v20  ;;  %v884_v41 = vadd.f32 1.0, %v1667_v30 }
  0xd6   : > { %v906_v32 = vmul.f32 %v874_v22, %v1935_v29  ;;  %v694_v42 = vmul.f32 0.044715, %v1982_v51  ;;  %v873_v7 = vadd.f32 1.0, %v1669_v39  ;;  %1672 = vtanh.f32 %v811_v36 }
  0xd7   : > { %v705_v40 = vmul.f32 %v673_v27, %v1974_v6  ;;  %v768_v43 = vadd.f32 %v736_v34, %v1950_v18  ;;  %v685_v44 = vmul.f32 0.044715, %v1987_v28  ;;  %v916_v47 = vmul.f32 %v884_v41, %v660_v57 }
  0xd8   : > { %v942_v31 = vmul.f32 %v1852_v4, %v906_v32  ;;  %v757_v48 = vmul.f32 %v725_v17, %v1947_v45  ;;  %v972_v56 = vsel %vm495_vm0, %v930_v26, 0.0  ;;  %v1032_v57 = vsel %vm495_vm0, %v950_v23, 0.0 }
  0xd9   : > { %v628_v33 = vpop.f32.mrf.mxu3  ;;  %v1671_v38 = vpop.eup %1670  ;;  %v800_v58 = vmul.f32 0.7978846, %v768_v43  ;;  %v737_v59 = vmul.f32 %v705_v40, %v1974_v6  ;;  %v905_v54 = vmul.f32 %v873_v7, %v1913_v53  ;;  %v726_v62 = vmul.f32 %v694_v42, %v1982_v51 }
  0xda   : > { %v2004_v49 = vadd.f32 %v1833_v19, %v628_v33  ;;  %v575_v29 = vpop.f32.mrf.mxu0  ;;  %v605_v50 = vpop.f32.mrf.mxu1  ;;  %v1008_v63 = vsel %vm495_vm0, %v942_v31, 0.0  ;;  %v863_v1 = vadd.f32 1.0, %v1671_v38  ;;  %v717_v2 = vmul.f32 %v685_v44, %v1987_v28 }
  0xdb   : > { %v2009_v18 = vadd.f32 %v1833_v19, %v575_v29  ;;  %v2012_v60 = vadd.f32 %v1833_v19, %v605_v50  ;;  %1674 = vtanh.f32 %v800_v58  ;;  %v952_v5 = vmul.f32 %v1852_v4, %v916_v47 }
  0xdc   : > { %973 = vadd.xlane.f32.xlu2 %v972_v56  ;;  %1033 = vadd.xlane.f32.xlu1 %v1032_v57  ;;  %v789_v0 = vadd.f32 %v757_v48, %v1947_v45  ;;  %v1673_v55 = vpop.eup %1672  ;;  %v695_v53 = vmul.f32 0.044715, %v2004_v49  ;;  %v895_v8 = vmul.f32 %v863_v1, %v1963_v61  ;;  %v661_v9 = vmul.f32 0.5, %v1947_v45 }
  0xdd   : > { %v686_v3 = vmul.f32 0.044715, %v2012_v60  ;;  %1009 = vadd.xlane.f32.xlu0 %v1008_v63  ;;  %v769_v52 = vadd.f32 %v737_v59, %v1974_v6  ;;  %v674_v10 = vmul.f32 0.044715, %v2009_v18  ;;  %v941_v11 = vmul.f32 %v1852_v4, %v905_v54 }
  0xde   : > { %v875_v12 = vadd.f32 1.0, %v1673_v55  ;;  %v821_v13 = vmul.f32 0.7978846, %v789_v0  ;;  %v931_v16 = vmul.f32 %v1852_v4, %v895_v8  ;;  %v748_v15 = vmul.f32 %v1979_v24, %v1954_v46 }
  0xdf   : > { %v718_v14 = vmul.f32 %v686_v3, %v2012_v60  ;;  %v801_v17 = vmul.f32 0.7978846, %v769_v52  ;;  %v1038_v61 = vsel %vm495_vm0, %v952_v5, 0.0  ;;  %v749_v21 = vmul.f32 %v717_v2, %v1987_v28 }
  0xe0   : > { %v907_v45 = vmul.f32 %v875_v12, %v651_v35  ;;  %1676 = vtanh.f32 %v821_v13  ;;  %v727_v27 = vmul.f32 %v695_v53, %v2004_v49  ;;  %v780_v26 = vadd.f32 %v748_v15, %v1954_v46 }
  0xe1   : > { %v630_v20 = vpop.f32.mrf.mxu3  ;;  %v1675_v25 = vpop.eup %1674  ;;  %1678 = vtanh.f32 %v801_v17  ;;  %v1005_v24 = vsel %vm495_vm0, %v941_v11, 0.0  ;;  %v781_v35 = vadd.f32 %v749_v21, %v1987_v28  ;;  %v975_v40 = vsel %vm495_vm0, %v931_v16, 0.0 }
  0xe2   : > { %v2036_v22 = vadd.f32 %v1833_v19, %v630_v20  ;;  %v578_v30 = vpop.f32.mrf.mxu0  ;;  %v864_v34 = vadd.f32 1.0, %v1675_v25  ;;  %v812_v23 = vmul.f32 0.7978846, %v780_v26  ;;  %v750_v32 = vmul.f32 %v718_v14, %v2012_v60 }
  0xe3   : > { %v2040_v36 = vadd.f32 %v1833_v19, %v578_v30  ;;  %v943_v42 = vmul.f32 %v1852_v4, %v907_v45  ;;  %v813_v43 = vmul.f32 0.7978846, %v781_v35  ;;  %v641_v33 = vmul.f32 0.5, %v1974_v6 }
  0xe4   : > { %v696_v39 = vmul.f32 0.044715, %v2036_v22  ;;  %1039 = vadd.xlane.f32.xlu2 %v1038_v61  ;;  %1006 = vadd.xlane.f32.xlu1 %v1005_v24  ;;  %v896_v7 = vmul.f32 %v864_v34, %v1992_v37  ;;  %1680 = vtanh.f32 %v812_v23  ;;  %v782_v31 = vadd.f32 %v750_v32, %v2012_v60 }
  0xe5   : > { %v675_v41 = vmul.f32 0.044715, %v2040_v36  ;;  %976 = vadd.xlane.f32.xlu0 %v975_v40  ;;  %v706_v48 = vmul.f32 %v674_v10, %v2009_v18  ;;  %1682 = vtanh.f32 %v813_v43  ;;  %v758_v29 = vmul.f32 %v726_v62, %v1982_v51 }
  0xe6   : > { %v728_v44 = vmul.f32 %v696_v39, %v2036_v22  ;;  %v1677_v47 = vpop.eup %1676  ;;  %v932_v38 = vmul.f32 %v1852_v4, %v896_v7  ;;  %v814_v58 = vmul.f32 0.7978846, %v782_v31  ;;  %v759_v59 = vmul.f32 %v727_v27, %v2004_v49 }
  0xe7   : > { %v1679_v50 = vpop.eup %1678  ;;  %v707_v56 = vmul.f32 %v675_v41, %v2040_v36  ;;  %v885_v37 = vadd.f32 1.0, %v1677_v47  ;;  %v1011_v6 = vsel %vm495_vm0, %v943_v42, 0.0  ;;  %v652_v54 = vmul.f32 0.5, %v1954_v46 }
  0xe8   : > { %v865_v57 = vadd.f32 1.0, %v1679_v50  ;;  %v790_v63 = vadd.f32 %v758_v29, %v1982_v51  ;;  %1684 = vtanh.f32 %v814_v58  ;;  %v791_v3 = vadd.f32 %v759_v59, %v2004_v49 }
  0xe9   : > { %v917_v2 = vmul.f32 %v885_v37, %v661_v9  ;;  %v760_v62 = vmul.f32 %v728_v44, %v2036_v22  ;;  %v978_v0 = vsel %vm495_vm0, %v932_v38, 0.0  ;;  %v739_v10 = vmul.f32 %v707_v56, %v2040_v36 }
  0xea   : > { %v580_v1 = vpop.f32.mrf.mxu0  ;;  %v897_v55 = vmul.f32 %v865_v57, %v641_v33  ;;  %v822_v53 = vmul.f32 0.7978846, %v790_v63  ;;  %v1681_v8 = vpop.eup %1680  ;;  %v823_v52 = vmul.f32 0.7978846, %v791_v3  ;;  %v738_v27 = vmul.f32 %v706_v48, %v2009_v18 }
  0xeb   : > { %v2064_v5 = vadd.f32 %v1833_v19, %v580_v1  ;;  %v953_v46 = vmul.f32 %v1852_v4, %v917_v2  ;;  %v792_v9 = vadd.f32 %v760_v62, %v2036_v22  ;;  %v1683_v11 = vpop.eup %1682  ;;  %v876_v13 = vadd.f32 1.0, %v1681_v8 }
  0xec   : > { %1012 = vadd.xlane.f32.xlu2 %v1011_v6  ;;  %979 = vadd.xlane.f32.xlu1 %v978_v0  ;;  %v653_v19 = vmul.f32 0.5, %v1987_v28  ;;  %1686 = vtanh.f32 %v822_v53  ;;  %v877_v16 = vadd.f32 1.0, %v1683_v11  ;;  %v933_v20 = vmul.f32 %v1852_v4, %v897_v55 }
  0xed   : > { %v676_v12 = vmul.f32 0.044715, %v2064_v5  ;;  %v1041_v14 = vsel %vm495_vm0, %v953_v46, 0.0  ;;  %1688 = vtanh.f32 %v823_v52  ;;  %v824_v17 = vmul.f32 0.7978846, %v792_v9 }
  0xee   : > { %1042 = vadd.xlane.f32.xlu0 %v1041_v14  ;;  %v908_v61 = vmul.f32 %v876_v13, %v652_v54  ;;  %v771_v45 = vadd.f32 %v739_v10, %v2040_v36  ;;  %v1685_v21 = vpop.eup %1684  ;;  %v909_v25 = vmul.f32 %v877_v16, %v653_v19  ;;  %v654_v30 = vmul.f32 0.5, %v2012_v60  ;;  %v2108_v16 = vld [vmem:[#allocation2] ss:$0 sm:$0xff] }
  0xef   : > { %v708_v15 = vmul.f32 %v676_v12, %v2064_v5  ;;  %1690 = vtanh.f32 %v824_v17  ;;  %v878_v26 = vadd.f32 1.0, %v1685_v21  ;;  %v770_v35 = vadd.f32 %v738_v27, %v2009_v18 }
  0xf0   : > { %v944_v28 = vmul.f32 %v1852_v4, %v908_v61  ;;  %v803_v24 = vmul.f32 0.7978846, %v771_v45  ;;  %v945_v34 = vmul.f32 %v1852_v4, %v909_v25  ;;  %v981_v23 = vsel %vm495_vm0, %v933_v20, 0.0 }
  0xf1   : > { %v740_v39 = vmul.f32 %v708_v15, %v2064_v5  ;;  %v910_v41 = vmul.f32 %v878_v26, %v654_v30  ;;  %v662_v60 = vmul.f32 0.5, %v1982_v51  ;;  %v802_v43 = vmul.f32 0.7978846, %v770_v35 }
  0xf2   : > { %v1687_v40 = vpop.eup %1686  ;;  %v1014_v32 = vsel %vm495_vm0, %v944_v28, 0.0  ;;  %1692 = vtanh.f32 %v803_v24  ;;  %v663_v33 = vmul.f32 0.5, %v2004_v49  ;;  %v1017_v48 = vsel %vm495_vm0, %v945_v34, 0.0 }
  0xf3   : > { %v1689_v42 = vpop.eup %1688  ;;  %v886_v7 = vadd.f32 1.0, %v1687_v40  ;;  %v772_v44 = vadd.f32 %v740_v39, %v2064_v5  ;;  %1694 = vtanh.f32 %v802_v43  ;;  %v946_v50 = vmul.f32 %v1852_v4, %v910_v41 }
  0xf4   : > { %982 = vadd.xlane.f32.xlu2 %v981_v23  ;;  %1015 = vadd.xlane.f32.xlu1 %v1014_v32  ;;  %v887_v31 = vadd.f32 1.0, %v1689_v42  ;;  %v664_v59 = vmul.f32 0.5, %v2036_v22  ;;  %v643_v6 = vmul.f32 0.5, %v2040_v36  ;;  %v642_v62 = vmul.f32 0.5, %v2009_v18 }
  0xf5   : > { %v1691_v47 = vpop.eup %1690  ;;  %v918_v38 = vmul.f32 %v886_v7, %v662_v60  ;;  %v804_v29 = vmul.f32 0.7978846, %v772_v44  ;;  %v1020_v54 = vsel %vm495_vm0, %v946_v50, 0.0  ;;  %v644_v52 = vmul.f32 0.5, %v2064_v5 }
  0xf6   : > { %1018 = vadd.xlane.f32.xlu0 %v1017_v48  ;;  %v919_v56 = vmul.f32 %v887_v31, %v663_v33  ;;  %v888_v37 = vadd.f32 1.0, %v1691_v47  ;;  %v1722_v19 = vmov 0  }
  0xf7   : > { %v954_v51 = vmul.f32 %v1852_v4, %v918_v38  ;;  %1696 = vtanh.f32 %v804_v29  ;;  %1629 = vset.pattern.permute.xlu1 %v1722_v19  ;;  %1628 = vset.pattern.permute.xlu2 %v1722_v19 }
  0xf8   : > { %v1693_v58 = vpop.eup %1692  ;;  %v955_v49 = vmul.f32 %v1852_v4, %v919_v56  ;;  %v920_v1 = vmul.f32 %v888_v37, %v664_v59  ;;  %1630 = vset.pattern.permute.xlu0 %v1722_v19  ;;  %v1104_v19 = vld [vmem:[%s2149_s21 + $0x78] sm:$0xff] }
  0xf9   : > { %v867_v57 = vadd.f32 1.0, %v1693_v58  ;;  %v1044_v63 = vsel %vm495_vm0, %v954_v51, 0.0  ;;  %v1695_v2 = vpop.eup %1694 }
  0xfa   : > { %v866_v0 = vadd.f32 1.0, %v1695_v2  ;;  %v1047_v22 = vsel %vm495_vm0, %v955_v49, 0.0  ;;  %v956_v53 = vmul.f32 %v1852_v4, %v920_v1 }
  0xfb   : > { %v899_v3 = vmul.f32 %v867_v57, %v643_v6 }
  0xfc   : > { %1021 = vadd.xlane.f32.xlu2 %v1020_v54  ;;  %1045 = vadd.xlane.f32.xlu1 %v1044_v63  ;;  %v898_v8 = vmul.f32 %v866_v0, %v642_v62  ;;  %v1050_v10 = vsel %vm495_vm0, %v956_v53, 0.0 }
  0xfd   : > { %v1697_v55 = vpop.eup %1696  ;;  %v935_v36 = vmul.f32 %v1852_v4, %v899_v3 }
  0xfe   : > { %1048 = vadd.xlane.f32.xlu0 %v1047_v22  ;;  %v868_v46 = vadd.f32 1.0, %v1697_v55  ;;  %v934_v9 = vmul.f32 %v1852_v4, %v898_v8 }
  0xff   : > { %v987_v11 = vsel %vm495_vm0, %v935_v36, 0.0 }
 0x100   : > { %v900_v18 = vmul.f32 %v868_v46, %v644_v52  ;;  %v984_v12 = vsel %vm495_vm0, %v934_v9, 0.0 }
 0x102   : > { %v936_v13 = vmul.f32 %v1852_v4, %v900_v18 }
 0x104   : > { %1051 = vadd.xlane.f32.xlu2 %v1050_v10  ;;  %988 = vadd.xlane.f32.xlu1 %v987_v11  ;;  %v990_v5 = vsel %vm495_vm0, %v936_v13, 0.0 }
 0x106   : > { %985 = vadd.xlane.f32.xlu0 %v984_v12 }
 0x10c   : > { %991 = vadd.xlane.f32.xlu2 %v990_v5 }
 0x120   : > { %v2106_v14 = vpop.xlane.xlu0 %958 }
 0x127   : > { %v1025_v17 = vpop.xlane.xlu1 %1024 }
 0x128   : > { %v1079_v15 = vadd.f32 %v2108_v16, %v1025_v17  ;;  %v995_v20 = vpop.xlane.xlu0 %994 }
 0x129   : > { %v1069_v61 = vadd.f32 %v2108_v16, %v995_v20 }
 0x12a   : > { %1233 = vperm.xlu1 %1629, %v1079_v15  }
 0x12b   : > { %1183 = vperm.xlu2 %1628, %v1069_v61   ;;  %v1057_v61 = vadd.f32 %v2108_v16, %v2106_v14 }
 0x12f   : > { %v998_v4 = vpop.xlane.xlu1 %997 }
 0x130   : > { %v1070_v45 = vadd.f32 %v2108_v16, %v998_v4  ;;  %v2113_v21 = vpop.xlane.xlu0 %961 }
 0x132   : > { %1188 = vperm.xlu1 %1629, %v1070_v45  }
 0x137   : > { %v1031_v25 = vpop.xlane.xlu2 %1030  ;;  %v2115_v27 = vpop.xlane.xlu1 %964 }
 0x138   : > { %v1081_v28 = vadd.f32 %v2108_v16, %v1031_v25  ;;  %v1028_v30 = vpop.xlane.xlu0 %1027  ;;  %v1059_v5 = vadd.f32 %v2108_v16, %v2115_v27  ;;  %v1058_v25 = vadd.f32 %v2108_v16, %v2113_v21 }
 0x139   : > { %v1080_v26 = vadd.f32 %v2108_v16, %v1028_v30  ;;  %v1102_v30 = vld [vmem:[%s2149_s21 + $0x68] sm:$0xff] }
 0x13a   : > { %1243 = vperm.xlu2 %1628, %v1081_v28   ;;  %v1103_v28 = vld [vmem:[%s2149_s21 + $0x70] sm:$0xff] }
 0x13b   : > { %1238 = vperm.xlu0 %1630, %v1080_v26  }
 0x13f   : > { %v1004_v24 = vpop.xlane.xlu2 %1003  ;;  %v1001_v34 = vpop.xlane.xlu1 %1000 }
 0x140   : > { %v1072_v35 = vadd.f32 %v2108_v16, %v1004_v24  ;;  %v1071_v39 = vadd.f32 %v2108_v16, %v1001_v34  ;;  %v1101_v34 = vld [vmem:[%s2149_s21 + $0x60] sm:$0xff] }
 0x142   : > { %1193 = vperm.xlu1 %1629, %v1071_v39   ;;  %1198 = vperm.xlu2 %1628, %v1072_v35  }
 0x147   : > { %v971_v40 = vpop.xlane.xlu2 %970  ;;  %v2121_v23 = vpop.xlane.xlu1 %967 }
 0x148   : > { %v1037_v32 = vpop.xlane.xlu0 %1036  ;;  %v1061_v10 = vadd.f32 %v2108_v16, %v971_v40  ;;  %v1060_v45 = vadd.f32 %v2108_v16, %v2121_v23 }
 0x149   : > { %v1083_v41 = vadd.f32 %v2108_v16, %v1037_v32 }
 0x14b   : > { %1253 = vperm.xlu0 %1630, %v1083_v41  }
 0x14f   : > { %v974_v42 = vpop.xlane.xlu2 %973  ;;  %v1034_v60 = vpop.xlane.xlu1 %1033 }
 0x150   : > { %v1082_v7 = vadd.f32 %v2108_v16, %v1034_v60  ;;  %v1010_v43 = vpop.xlane.xlu0 %1009  ;;  %v1062_v46 = vadd.f32 %v2108_v16, %v974_v42  ;;  %v1120_v42 = vld [vmem:[%s2149_s21 + $0xf8] sm:$0xff] }
 0x151   : > { %v1074_v11 = vadd.f32 %v2108_v16, %v1010_v43 }
 0x152   : > { %1248 = vperm.xlu1 %1629, %v1082_v7  }
 0x157   : > { %v1040_v44 = vpop.xlane.xlu2 %1039  ;;  %v1007_v33 = vpop.xlane.xlu1 %1006 }
 0x158   : > { %v1084_v31 = vadd.f32 %v2108_v16, %v1040_v44  ;;  %v977_v47 = vpop.xlane.xlu0 %976  ;;  %v1073_v13 = vadd.f32 %v2108_v16, %v1007_v33  ;;  %v1119_v44 = vld [vmem:[%s2149_s21 + $0xf0] sm:$0xff]  ;;  %v1118_v33 = vld [vmem:[%s2149_s21 + $0xe8] sm:$0xff] }
 0x159   : > { %v1063_v18 = vadd.f32 %v2108_v16, %v977_v47 }
 0x15a   : > { %1258 = vperm.xlu2 %1628, %v1084_v31  }
 0x15f   : > { %v1013_v48 = vpop.xlane.xlu2 %1012  ;;  %v980_v38 = vpop.xlane.xlu1 %979 }
 0x160   : > { %v1064_v1 = vadd.f32 %v2108_v16, %v980_v38  ;;  %v1075_v17 = vadd.f32 %v2108_v16, %v1013_v48  ;;  %v1117_v38 = vld [vmem:[%s2149_s21 + $0xe0] sm:$0xff] }
 0x161   : > { %v1043_v29 = vpop.xlane.xlu0 %1042 }
 0x162   : > { %v1085_v50 = vadd.f32 %v2108_v16, %v1043_v29 }
 0x164   : > { %1263 = vperm.xlu2 %1628, %v1085_v50   ;;  %v1116_v50 = vld [vmem:[%s2149_s21 + $0xd8] sm:$0xff] }
 0x167   : > { %v983_v56 = vpop.xlane.xlu2 %982  ;;  %v1016_v37 = vpop.xlane.xlu1 %1015 }
 0x168   : > { %v1065_v51 = vadd.f32 %v2108_v16, %v983_v56  ;;  %v1076_v55 = vadd.f32 %v2108_v16, %v1016_v37 }
 0x169   : > { %v1019_v58 = vpop.xlane.xlu0 %1018 }
 0x16a   : > { %1163 = vperm.xlu0 %1630, %v1065_v51   ;;  %v1077_v3 = vadd.f32 %v2108_v16, %v1019_v58  ;;  %v1115_v51 = vld [vmem:[%s2149_s21 + $0xd0] sm:$0xff] }
 0x16f   : > { %v1022_v59 = vpop.xlane.xlu2 %1021  ;;  %v1046_v49 = vpop.xlane.xlu1 %1045 }
 0x170   : > { %v1086_v6 = vadd.f32 %v2108_v16, %v1046_v49  ;;  %v1078_v52 = vadd.f32 %v2108_v16, %v1022_v59  ;;  %v1114_v59 = vld [vmem:[%s2149_s21 + $0xc8] sm:$0xff] }
 0x171   : > { %v1049_v57 = vpop.xlane.xlu0 %1048 }
 0x172   : > { %1268 = vperm.xlu1 %1629, %v1086_v6   ;;  %v1087_v54 = vadd.f32 %v2108_v16, %v1049_v57  ;;  %v1113_v57 = vld [vmem:[%s2149_s21 + $0xc0] sm:$0xff] }
 0x174   : > { %1273 = vperm.xlu0 %1630, %v1087_v54  }
 0x177   : > { %v1052_v63 = vpop.xlane.xlu2 %1051  ;;  %v989_v36 = vpop.xlane.xlu1 %988 }
 0x178   : > { %v1088_v53 = vadd.f32 %v2108_v16, %v1052_v63  ;;  %v1067_v8 = vadd.f32 %v2108_v16, %v989_v36 }
 0x179   : > { %v986_v2 = vpop.xlane.xlu0 %985 }
 0x17a   : > { %1158 = vperm.xlu1 %1629, %v1064_v1   ;;  %v1066_v62 = vadd.f32 %v2108_v16, %v986_v2  ;;  %v1112_v1 = vld [vmem:[%s2149_s21 + $0xb8] sm:$0xff] }
 0x17c   : > { %1223 = vperm.xlu0 %1630, %v1077_v3   ;;  %1168 = vperm.xlu2 %1628, %v1066_v62   ;;  %v1111_v62 = vld [vmem:[%s2149_s21 + $0xb0] sm:$0xff] }
 0x17f   : > { %v992_v0 = vpop.xlane.xlu2 %991 }
 0x180   : > { %v1068_v22 = vadd.f32 %v2108_v16, %v992_v0  ;;  %v1100_v0 = vld [vmem:[%s2149_s21 + $0x58] sm:$0xff] }
 0x182   : > { %1218 = vperm.xlu1 %1629, %v1076_v55  }
 0x184   : > { %1178 = vperm.xlu0 %1630, %v1068_v22   ;;  %1278 = vperm.xlu2 %1628, %v1088_v53   ;;  %v1110_v22 = vld [vmem:[%s2149_s21 + $0xa8] sm:$0xff] }
 0x187   : > { %v1184_v9 = vpop.permute.xlu2 %1183 }
 0x188   : > { %v1293_v14 = vmul.f32 %v1184_v9, %v1101_v34  ;;  %v1099_v9 = vld [vmem:[%s2149_s21 + $0x50] sm:$0xff] }
 0x18a   : > { %1173 = vperm.xlu1 %1629, %v1067_v8  }
 0x18c   : > { %1148 = vperm.xlu0 %1630, %v1062_v46   ;;  %1228 = vperm.xlu2 %1628, %v1078_v52   ;;  %v1109_v46 = vld [vmem:[%s2149_s21 + $0xa0] sm:$0xff] }
 0x192   : > { %1143 = vperm.xlu1 %1629, %v1061_v10   ;;  %v1108_v10 = vld [vmem:[%s2149_s21 + $0x98] sm:$0xff] }
 0x194   : > { %v2142_v12 = vpop.permute.xlu2 %1243  ;;  %1208 = vperm.xlu0 %1630, %v1074_v11   ;;  %1153 = vperm.xlu2 %1628, %v1063_v18   ;;  %v1098_v18 = vld [vmem:[%s2149_s21 + $0x48] sm:$0xff] }
 0x195   : > { %v1305_v2 = vmul.f32 %v2142_v12, %v1113_v57 }
 0x19a   : > { %1203 = vperm.xlu1 %1629, %v1073_v13  }
 0x19c   : > { %v1199_v15 = vpop.permute.xlu2 %1198  ;;  %1133 = vperm.xlu0 %1630, %v1059_v5   ;;  %1213 = vperm.xlu2 %1628, %v1075_v17   ;;  %v1234_v4 = vpop.permute.xlu1 %1233  ;;  %v1097_v17 = vld [vmem:[%s2149_s21 + $0x40] sm:$0xff] }
 0x19d   : > { %v1296_v20 = vmul.f32 %v1199_v15, %v1104_v19  ;;  %v1303_v36 = vmul.f32 %v1234_v4, %v1111_v62  ;;  %v1107_v19 = vld [vmem:[%s2149_s21 + $0x90] sm:$0xff]  ;;  %v1096_v4 = vld [vmem:[%s2149_s21 + $0x38] sm:$0xff] }
 0x19f   : > { %1317 = vmatpush.msrb.mxu1 %v1296_v20 }
 0x1a2   : > { %1123 = vperm.xlu1 %1629, %v1057_v61  }
 0x1a4   : > { %1138 = vperm.xlu2 %1628, %v1060_v45   ;;  %v1189_v27 = vpop.permute.xlu1 %1188 }
 0x1a5   : > { %v1294_v35 = vmul.f32 %v1189_v27, %v1102_v30  ;;  %v1095_v27 = vld [vmem:[%s2149_s21 + $0x30] sm:$0xff]  ;;  %v1094_v30 = vld [vmem:[%s2149_s21 + $0x28] sm:$0xff] }
 0x1ac   : > { %1128 = vperm.xlu2 %1628, %v1058_v25  }
 0x1ad   : > { %v1239_v40 = vpop.permute.xlu0 %1238 }
 0x1ae   : > { %v1304_v55 = vmul.f32 %v1239_v40, %v1112_v1 }
 0x1b4   : > { %v1194_v26 = vpop.permute.xlu1 %1193  ;;  %v1259_v39 = vpop.permute.xlu2 %1258 }
 0x1b5   : > { %v1295_v24 = vmul.f32 %v1194_v26, %v1103_v28  ;;  %v1308_v58 = vmul.f32 %v1259_v39, %v1116_v50 }
 0x1b7   : > { %1318 = vmatpush.msrb.mxu1 %v1295_v24 }
 0x1b9   : > { %1319 = vmatpush.msrb.mxu1 %v1294_v35  ;;  %v1106_v35 = vld [vmem:[%s2149_s21 + $0x88] sm:$0xff] }
 0x1bb   : > { %1320 = vmatpush.msrb.mxu1 %v1293_v14  ;;  %v1093_v14 = vld [vmem:[%s2149_s21 + $0x20] sm:$0xff] }
 0x1bd   : > { %v1254_v16 = vpop.permute.xlu0 %1253 }
 0x1be   : > { %v1264_v23 = vpop.permute.xlu2 %1263  ;;  %v1307_v6 = vmul.f32 %v1254_v16, %v1115_v51  ;;  %v1315_v51 = vld [vmem:[%s2227_s6 + $0x10] sm:$0xff] }
 0x1bf   : > { %v1309_v56 = vmul.f32 %v1264_v23, %v1117_v38  ;;  %v1092_v23 = vld [vmem:[%s2149_s21 + $0x18] sm:$0xff]  ;;  %v1089_v38 = vld [vmem:[%s2149_s21] sm:$0xff] }
 0x1c4   : > { %v1249_v32 = vpop.permute.xlu1 %1248 }
 0x1c5   : > { %v1306_v63 = vmul.f32 %v1249_v32, %v1114_v59  ;;  %v1105_v32 = vld [vmem:[%s2149_s21 + $0x80] sm:$0xff] }
 0x1d6   : > { %v1169_v21 = vpop.permute.xlu2 %1168 }
 0x1d7   : > { %v1290_v20 = vmul.f32 %v1169_v21, %v1098_v18 }
 0x1dc   : > { %v2164_v41 = vpop.permute.xlu0 %1163 }
 0x1dd   : > { %v1289_v25 = vmul.f32 %v2164_v41, %v1097_v17 }
 0x1de   : > { %v1279_v60 = vpop.permute.xlu2 %1278 }
 0x1df   : > { %v1312_v7 = vmul.f32 %v1279_v60, %v1120_v42 }
 0x1e1   : > { %1340 = vmatpush.msra.mxu2 %v1312_v7  ;;  %v1091_v7 = vld [vmem:[%s2149_s21 + $0x10] sm:$0xff] }
 0x1e4   : > { %v1269_v43 = vpop.permute.xlu1 %1268 }
 0x1e5   : > { %v1310_v29 = vmul.f32 %v1269_v43, %v1118_v33  ;;  %v1314_v43 = vld [vmem:[%s2227_s6 + $0x8] sm:$0xff] }
 0x1e6   : > { %v1229_v31 = vpop.permute.xlu2 %1228  ;;  %v1274_v47 = vpop.permute.xlu0 %1273 }
 0x1e7   : > { %v1311_v48 = vmul.f32 %v1274_v47, %v1119_v44  ;;  %v1302_v52 = vmul.f32 %v1229_v31, %v1110_v22  ;;  %v1090_v44 = vld [vmem:[%s2149_s21 + $0x8] sm:$0xff] }
 0x1e9   : > { %1341 = vmatpush.msra.mxu2 %v1311_v48 }
 0x1eb   : > { %1342 = vmatpush.msra.mxu2 %v1310_v29 }
 0x1ec   : > { %v1159_v37 = vpop.permute.xlu1 %1158 }
 0x1ed   : > { %1343 = vmatpush.msra.mxu2 %v1309_v56  ;;  %v1288_v28 = vmul.f32 %v1159_v37, %v1096_v4  ;;  %v1313_v56 = vld [vmem:[%s2227_s6] sm:$0xff]  ;;  %v1316_v37 = vld [vmem:[%s2227_s6 + $0x18] sm:$0xff] }
 0x1ee   : > { %v1224_v49 = vpop.permute.xlu0 %1223  ;;  %v1154_v54 = vpop.permute.xlu2 %1153 }
 0x1ef   : > { %1344 = vmatpush.msra.mxu2 %v1308_v58  ;;  %v1301_v12 = vmul.f32 %v1224_v49, %v1109_v46  ;;  %v1287_v24 = vmul.f32 %v1154_v54, %v1095_v27 }
 0x1f1   : > { %1345 = vmatpush.msra.mxu2 %v1307_v6 }
 0x1f3   : > { %1346 = vmatpush.msra.mxu2 %v1306_v63 }
 0x1f4   : > { %v1219_v3 = vpop.permute.xlu1 %1218 }
 0x1f5   : > { %1347 = vmatpush.msra.mxu2 %v1305_v2  ;;  %v1300_v15 = vmul.f32 %v1219_v3, %v1108_v10 }
 0x1f6   : > { %v1179_v53 = vpop.permute.xlu0 %1178  ;;  %v1214_v11 = vpop.permute.xlu2 %1213 }
 0x1f7   : > { %v1292_v8 = vmul.f32 %v1179_v53, %v1100_v0  ;;  %1348 = vmatpush.msra.mxu2 %v1304_v55  ;;  %v1299_v45 = vmul.f32 %v1214_v11, %v1107_v19 }
 0x1f9   : > { %1321 = vmatpush.msrb.mxu1 %v1292_v8  ;;  %1349 = vmatpush.msra.mxu2 %v1303_v36 }
 0x1fb   : > { %1350 = vmatpush.msra.mxu2 %v1302_v52 }
 0x1fc   : > { %v1174_v13 = vpop.permute.xlu1 %1173 }
 0x1fd   : > { %v1291_v5 = vmul.f32 %v1174_v13, %v1099_v9  ;;  %1351 = vmatpush.msra.mxu2 %v1301_v12 }
 0x1fe   : > { %v1149_v61 = vpop.permute.xlu0 %1148  ;;  %v1139_v34 = vpop.permute.xlu2 %1138 }
 0x1ff   : > { %1322 = vmatpush.msrb.mxu1 %v1291_v5  ;;  %1352 = vmatpush.msra.mxu2 %v1300_v15  ;;  %v1286_v39 = vmul.f32 %v1149_v61, %v1094_v30  ;;  %v1284_v41 = vmul.f32 %v1139_v34, %v1092_v23 }
 0x201   : > { %1323 = vmatpush.msrb.mxu1 %v1290_v20  ;;  %1353 = vmatpush.msra.mxu2 %v1299_v45 }
 0x203   : > { %1324 = vmatpush.msrb.mxu1 %v1289_v25 }
 0x204   : > { %v1144_v26 = vpop.permute.xlu1 %1143 }
 0x205   : > { %1325 = vmatpush.msrb.mxu1 %v1288_v28  ;;  %v1285_v21 = vmul.f32 %v1144_v26, %v1093_v14 }
 0x206   : > { %v1209_v40 = vpop.permute.xlu0 %1208  ;;  %v1129_v33 = vpop.permute.xlu2 %1128 }
 0x207   : > { %1326 = vmatpush.msrb.mxu1 %v1287_v24  ;;  %v1298_v16 = vmul.f32 %v1209_v40, %v1106_v35  ;;  %v1282_v48 = vmul.f32 %v1129_v33, %v1090_v44 }
 0x209   : > { %1327 = vmatpush.msrb.mxu1 %v1286_v39  ;;  %1354 = vmatpush.msra.mxu2 %v1298_v16 }
 0x20b   : > { %1328 = vmatpush.msrb.mxu1 %v1285_v21 }
 0x20c   : > { %v1204_v42 = vpop.permute.xlu1 %1203 }
 0x20d   : > { %v1297_v60 = vmul.f32 %v1204_v42, %v1105_v32  ;;  %1329 = vmatpush.msrb.mxu1 %v1284_v41 }
 0x20e   : > { %v1134_v31 = vpop.permute.xlu0 %1133 }
 0x20f   : > { %1355 = vmatpush.msra.mxu2 %v1297_v60  ;;  %v1283_v47 = vmul.f32 %v1134_v31, %v1091_v7 }
 0x210   : > { %1356 = vmatmul.f32.vlgmr.msra.gmra.mxu2 %v1314_v43 }
 0x211   : > { %1330 = vmatpush.msrb.mxu1 %v1283_v47 }
 0x213   : > { %1331 = vmatpush.msrb.mxu1 %v1282_v48 }
 0x214   : > { %v1124_v29 = vpop.permute.xlu1 %1123 }
 0x215   : > { %v1281_v50 = vmul.f32 %v1124_v29, %v1089_v38 }
 0x217   : > { %1332 = vmatpush.msrb.mxu1 %v1281_v50 }
 0x218   : > { %1333 = vmatmul.f32.vlgmr.msrb.gmra.mxu1 %v1313_v56  ;;  %1359 = vmatmul.f32.gmra.mxu2 %v1316_v37 }
 0x220   : > { %1336 = vmatmul.f32.gmra.mxu1 %v1315_v51 }
 0x293   : > { %v1357_v58 = vpop.f32.mrf.mxu2 }
 0x295   : > { %v1334_v59 = vpop.f32.mrf.mxu1 }
 0x296   : > { %v1358_v49 = vadd.f32 %v1357_v58, %v1334_v59 }
 0x298   : > { %1364 = vst.msk [vmem:[%s360_s13] sm:$0xff] %vm1363_vm1, %v1358_v49 }
 0x29b   : > { %v1360_v6 = vpop.f32.mrf.mxu2 }
 0x29d   : > { %v1337_v57 = vpop.f32.mrf.mxu1 }
 0x29e   : > { %v1361_v54 = vadd.f32 %v1360_v6, %v1337_v57 }
 0x2a0   : > { %1365 = vst.msk [vmem:[%s360_s13 + $0x8] sm:$0xff] %vm1363_vm1, %v1361_v54 }
 0x2a1 PF: > { %s19_s28 = sadd.s32 1, %s1720_s28   ;;  %s2229_s26 = smov %s1716_s27 }
 0x2a2   : > { %p16_p5 = scmp.ge.s32.totalorder %s19_s28, 4   ;;  %s2230_s27 = smov %s2232_s5 }
 0x2a4   :  { %18 = sbr.rel (!%p16_p5) target bundleno = 3 (0x3), region = 81 }

</bundles_post_ra>
